<compile_context>
chip_gen: v7x
topology: tpu7x:2x2x1
jax: 0.10.0
libtpu: 0.0.40
codegen_flags: <defaults>
</compile_context>

<pallas_src>
import functools

import jax
import jax.numpy as jnp
from jax.experimental import pallas as pl
from jax.experimental.pallas import tpu as pltpu


def _round_up(v, m):
    return (v + m - 1) // m * m


def _pad2(a, rows, cols):
    return jnp.pad(a, ((0, rows - a.shape[0]), (0, cols - a.shape[1])))


def graphconv_kernel(a_ref, xn_ref, xr_ref, w_ref, b_ref, out_ref, acc_ref,
                     *, apply_relu):
    """One GraphConv layer, tiled over (row_block i, reduction_block k).

    a_ref  : (tile, tile)   bf16   adjacency tile A[i-block, k-block]
    xn_ref : (tile, Fp)     bf16   neighbor feature rows (k-block)
    xr_ref : (tile, Fp)     f32    root feature rows (i-block)
    w_ref  : (2*Fp, Hp)     f32    stacked [W_root; W_nbr]
    b_ref  : (1, Hp)        f32    bias
    out_ref: (tile, Hp)     f32
    acc_ref: (tile, Fp)     f32    neighbor-aggregation accumulator (scratch)
    """
    k = pl.program_id(1)

    @pl.when(k == 0)
    def _():
        acc_ref[...] = jnp.zeros_like(acc_ref)

    # Pure MXU accumulate in the reduction loop: bf16 x bf16 -> f32.
    acc_ref[...] += jnp.dot(a_ref[...], xn_ref[...],
                            preferred_element_type=jnp.float32)

    @pl.when(k == pl.num_programs(1) - 1)
    def _():
        # Single fused weight matmul (K = 2*Fp) + bias + activation, finalize only.
        feats = jnp.concatenate([xr_ref[...], acc_ref[...]], axis=-1)  # (tile, 2*Fp)
        y = jnp.dot(feats, w_ref[...],
                    preferred_element_type=jnp.float32) + b_ref[...]
        if apply_relu:
            y = jnp.maximum(y, 0.0)
        out_ref[...] = y.astype(out_ref.dtype)


def _graphconv(adj_bf16, x_nbr, x_root, w_stacked, b, *, apply_relu, tile):
    n_pad = adj_bf16.shape[0]
    f_pad = x_nbr.shape[1]
    h_pad = w_stacked.shape[1]
    grid = (n_pad // tile, n_pad // tile)

    kernel = functools.partial(graphconv_kernel, apply_relu=apply_relu)

    return pl.pallas_call(
        kernel,
        out_shape=jax.ShapeDtypeStruct((n_pad, h_pad), jnp.float32),
        grid=grid,
        in_specs=[
            pl.BlockSpec((tile, tile), lambda i, k: (i, k)),        # A tile
            pl.BlockSpec((tile, f_pad), lambda i, k: (k, 0)),       # neighbor rows (bf16)
            pl.BlockSpec((tile, f_pad), lambda i, k: (i, 0)),       # root rows (f32)
            pl.BlockSpec((2 * f_pad, h_pad), lambda i, k: (0, 0)),  # stacked weights (resident)
            pl.BlockSpec((1, h_pad), lambda i, k: (0, 0)),          # bias (resident)
        ],
        out_specs=pl.BlockSpec((tile, h_pad), lambda i, k: (i, 0)),
        scratch_shapes=[pltpu.VMEM((tile, f_pad), jnp.float32)],
        compiler_params=pltpu.CompilerParams(
            dimension_semantics=("parallel", "arbitrary")),
    )(adj_bf16, x_nbr, x_root, w_stacked, b)


def gnn_forward(x, edge_index, params, *, tile=128):
    """x: [N, Fin] float32, edge_index: [2, E] int32 (row 0 = src, row 1 = dst)."""
    n, fin = x.shape
    w1r, w1n, b1, w2r, w2n, b2 = params
    hid = w1r.shape[1]
    out_dim = w2r.shape[1]

    lane = 128
    assert tile % lane == 0, "tile must be a multiple of 128 (lane width)"
    n_pad = _round_up(n, tile)
    f_pad = _round_up(fin, lane)
    h_pad = _round_up(hid, lane)
    o_pad = _round_up(out_dim, lane)

    # Glue (outside the kernel): densify edge list into adjacency A[dst, src] += 1,
    # padded to n_pad. bf16 is exact for small integer multiplicities.
    src, dst = edge_index[0], edge_index[1]
    adj = jnp.zeros((n_pad, n_pad), jnp.float32).at[dst, src].add(1.0)
    adj_bf16 = adj.astype(jnp.bfloat16)

    x_pad = _pad2(x, n_pad, f_pad)

    # Stack [W_root; W_nbr] per layer (wrapper-side, free) and zero-pad to lane width.
    w1s = jnp.concatenate([_pad2(w1r, f_pad, h_pad), _pad2(w1n, f_pad, h_pad)], axis=0)
    b1p = _pad2(b1, 1, h_pad)
    w2s = jnp.concatenate([_pad2(w2r, h_pad, o_pad), _pad2(w2n, h_pad, o_pad)], axis=0)
    b2p = _pad2(b2, 1, o_pad)

    # Layer 1: GraphConv + ReLU.
    h = _graphconv(adj_bf16, x_pad.astype(jnp.bfloat16), x_pad, w1s, b1p,
                   apply_relu=True, tile=tile)
    # Layer 2: GraphConv.
    out = _graphconv(adj_bf16, h.astype(jnp.bfloat16), h, w2s, b2p,
                     apply_relu=False, tile=tile)
    return out[:n, :out_dim]


def init_params(key, input_size, hidden_size, output_size):
    """Deterministic parameter init. Weights stored as [in, out] so the kernel
    computes x @ W (equivalent to PyTorch's x @ W.T with W of shape [out, in])."""
    ks = jax.random.split(key, 6)

    def lin(k, fan_in, fan_out):
        bound = 1.0 / jnp.sqrt(fan_in)
        return jax.random.uniform(k, (fan_in, fan_out), jnp.float32, -bound, bound)

    w1_root = lin(ks[0], input_size, hidden_size)      # lin_root (no bias)
    w1_nbr = lin(ks[1], input_size, hidden_size)       # lin_rel
    b1 = jax.random.uniform(ks[2], (1, hidden_size), jnp.float32,
                            -1.0 / jnp.sqrt(input_size), 1.0 / jnp.sqrt(input_size))
    w2_root = lin(ks[3], hidden_size, output_size)
    w2_nbr = lin(ks[4], hidden_size, output_size)
    b2 = jax.random.uniform(ks[5], (1, output_size), jnp.float32,
                            -1.0 / jnp.sqrt(hidden_size), 1.0 / jnp.sqrt(hidden_size))
    return (w1_root, w1_nbr, b1, w2_root, w2_nbr, b2)


if __name__ == "__main__":
    key = jax.random.PRNGKey(0)
    k_x, k_e, k_p = jax.random.split(key, 3)

    # 160 nodes pads to 256 -> grid (2, 2): exercises both the parallel row axis
    # and the k-reduction accumulator (init / accumulate / finalize).
    num_nodes = 160
    num_edges = 480
    input_size, hidden_size, output_size = 16, 32, 8

    x = jax.random.normal(k_x, (num_nodes, input_size), jnp.float32)
    edge_index = jax.random.randint(k_e, (2, num_edges), 0, num_nodes, jnp.int32)
    params = init_params(k_p, input_size, hidden_size, output_size)

    out = gnn_forward(x, edge_index, params)
    jax.block_until_ready(out)

    # Pure-JAX reference with the same numerics (bf16 adjacency/neighbor operands,
    # f32 accumulation, f32 root term and weights).
    w1r, w1n, b1, w2r, w2n, b2 = params
    adj = jnp.zeros((num_nodes, num_nodes), jnp.float32).at[
        edge_index[1], edge_index[0]].add(1.0)
    adjb = adj.astype(jnp.bfloat16)
    agg1 = jnp.dot(adjb, x.astype(jnp.bfloat16), preferred_element_type=jnp.float32)
    h_ref = jnp.maximum(x @ w1r + agg1 @ w1n + b1, 0.0)
    agg2 = jnp.dot(adjb, h_ref.astype(jnp.bfloat16), preferred_element_type=jnp.float32)
    out_ref = h_ref @ w2r + agg2 @ w2n + b2

    assert out.shape == (num_nodes, output_size)
    assert jnp.allclose(out, out_ref, atol=1e-3, rtol=1e-3)

    print("KERNEL_OK")
</pallas_src>

<mosaic_0001>
module attributes {stable_mosaic.version = 11 : i64} {
  func.func @graphconv_kernel(%arg0: i32, %arg1: i32, %arg2: memref<128x128xbf16, #tpu.memory_space<vmem>>, %arg3: memref<128x128xbf16, #tpu.memory_space<vmem>>, %arg4: memref<128x128xf32, #tpu.memory_space<vmem>>, %arg5: memref<256x128xf32, #tpu.memory_space<vmem>>, %arg6: memref<1x128xf32, #tpu.memory_space<vmem>>, %arg7: memref<128x128xf32, #tpu.memory_space<vmem>>, %arg8: memref<128x128xf32, #tpu.memory_space<vmem>>) attributes {dimension_semantics = [#tpu.dimension_semantics<parallel>, #tpu.dimension_semantics<arbitrary>], iteration_bounds = array<i64: 2, 2>, scalar_prefetch = 0 : i64, scratch_operands = 1 : i64, tpu.core_type = #tpu.core_type<tc>, window_params = [{transform_indices = @transform_0, window_bounds = array<i64: 128, 128>}, {transform_indices = @transform_1, window_bounds = array<i64: 128, 128>}, {transform_indices = @transform_2, window_bounds = array<i64: 128, 128>}, {pipeline_mode = #tpu.pipeline_mode<synchronous>, transform_indices = @transform_3, window_bounds = array<i64: 256, 128>}, {pipeline_mode = #tpu.pipeline_mode<synchronous>, transform_indices = @transform_4, window_bounds = array<i64: 1, 128>}, {transform_indices = @transform_5, window_bounds = array<i64: 128, 128>}]} {
    %c0_i32 = arith.constant 0 : i32
    %0 = arith.cmpi eq, %arg1, %c0_i32 : i32
    %1 = arith.extui %0 : i1 to i32
    %c0_i32_0 = arith.constant 0 : i32
    %2 = arith.cmpi ne, %1, %c0_i32_0 : i32
    scf.if %2 {
      %cst_9 = arith.constant 0.000000e+00 : f32
      %12 = vector.broadcast %cst_9 : f32 to vector<128x128xf32>
      %c0_10 = arith.constant 0 : index
      %c0_11 = arith.constant 0 : index
      %13 = vector.load %arg8[%c0_10, %c0_11] : memref<128x128xf32, #tpu.memory_space<vmem>>, vector<128x128xf32>
      tpu.vector_store %arg8[%c0_10, %c0_11], %12 {strides = array<i32>} : memref<128x128xf32, #tpu.memory_space<vmem>>, vector<128x128xf32>,
    } else {
    }
    %c0 = arith.constant 0 : index
    %c0_1 = arith.constant 0 : index
    %3 = vector.load %arg8[%c0, %c0_1] : memref<128x128xf32, #tpu.memory_space<vmem>>, vector<128x128xf32>
    %c0_2 = arith.constant 0 : index
    %c0_3 = arith.constant 0 : index
    %4 = vector.load %arg2[%c0_2, %c0_3] : memref<128x128xbf16, #tpu.memory_space<vmem>>, vector<128x128xbf16>
    %c0_4 = arith.constant 0 : index
    %c0_5 = arith.constant 0 : index
    %5 = vector.load %arg3[%c0_4, %c0_5] : memref<128x128xbf16, #tpu.memory_space<vmem>>, vector<128x128xbf16>
    %cst = arith.constant dense<0.000000e+00> : vector<128x128xf32>
    %6 = tpu.matmul %4, %5, %cst {dimension_numbers = #tpu.dot_dimension_numbers<[1], [0], [0], [1], [0, 0, 1, 1], [], []>} : vector<128x128xbf16>, vector<128x128xbf16>, vector<128x128xf32> -> vector<128x128xf32>
    %7 = arith.addf %3, %6 : vector<128x128xf32>
    %c0_6 = arith.constant 0 : index
    %c0_7 = arith.constant 0 : index
    %8 = vector.load %arg8[%c0_6, %c0_7] : memref<128x128xf32, #tpu.memory_space<vmem>>, vector<128x128xf32>
    tpu.vector_store %arg8[%c0_6, %c0_7], %7 {strides = array<i32>} : memref<128x128xf32, #tpu.memory_space<vmem>>, vector<128x128xf32>,
    %c1_i32 = arith.constant 1 : i32
    %9 = arith.cmpi eq, %arg1, %c1_i32 : i32
    %10 = arith.extui %9 : i1 to i32
    %c0_i32_8 = arith.constant 0 : i32
    %11 = arith.cmpi ne, %10, %c0_i32_8 : i32
    scf.if %11 {
      %c0_9 = arith.constant 0 : index
      %c0_10 = arith.constant 0 : index
      %12 = vector.load %arg4[%c0_9, %c0_10] : memref<128x128xf32, #tpu.memory_space<vmem>>, vector<128x128xf32>
      %c0_11 = arith.constant 0 : index
      %c0_12 = arith.constant 0 : index
      %13 = vector.load %arg8[%c0_11, %c0_12] : memref<128x128xf32, #tpu.memory_space<vmem>>, vector<128x128xf32>
      %14 = tpu.concatenate %12, %13 in 1 : vector<128x128xf32>, vector<128x128xf32> -> vector<128x256xf32>
      %c0_13 = arith.constant 0 : index
      %c0_14 = arith.constant 0 : index
      %15 = vector.load %arg5[%c0_13, %c0_14] : memref<256x128xf32, #tpu.memory_space<vmem>>, vector<256x128xf32>
      %cst_15 = arith.constant dense<0.000000e+00> : vector<128x128xf32>
      %16 = tpu.matmul %14, %15, %cst_15 {dimension_numbers = #tpu.dot_dimension_numbers<[1], [0], [0], [1], [0, 0, 1, 1], [], []>} : vector<128x256xf32>, vector<256x128xf32>, vector<128x128xf32> -> vector<128x128xf32>
      %c0_16 = arith.constant 0 : index
      %c0_17 = arith.constant 0 : index
      %17 = vector.load %arg6[%c0_16, %c0_17] : memref<1x128xf32, #tpu.memory_space<vmem>>, vector<1x128xf32>
      %18 = vector.broadcast %17 : vector<1x128xf32> to vector<128x128xf32>
      %19 = arith.addf %16, %18 : vector<128x128xf32>
      %cst_18 = arith.constant 0.000000e+00 : f32
      %20 = vector.broadcast %cst_18 : f32 to vector<128x128xf32>
      %21 = arith.maximumf %19, %20 : vector<128x128xf32>
      %c0_19 = arith.constant 0 : index
      %c0_20 = arith.constant 0 : index
      %22 = vector.load %arg7[%c0_19, %c0_20] : memref<128x128xf32, #tpu.memory_space<vmem>>, vector<128x128xf32>
      tpu.vector_store %arg7[%c0_19, %c0_20], %21 {strides = array<i32>} : memref<128x128xf32, #tpu.memory_space<vmem>>, vector<128x128xf32>,
    } else {
    }
    return
  }
  func.func @transform_0(%arg0: i32, %arg1: i32) -> (i32, i32) {
    %c0_i32 = arith.constant 0 : i32
    return %arg0, %arg1 : i32, i32
  }
  func.func @transform_1(%arg0: i32, %arg1: i32) -> (i32, i32) {
    %c0_i32 = arith.constant 0 : i32
    %c0_i32_0 = arith.constant 0 : i32
    return %arg1, %c0_i32 : i32, i32
  }
  func.func @transform_2(%arg0: i32, %arg1: i32) -> (i32, i32) {
    %c0_i32 = arith.constant 0 : i32
    %c0_i32_0 = arith.constant 0 : i32
    return %arg0, %c0_i32 : i32, i32
  }
  func.func @transform_3(%arg0: i32, %arg1: i32) -> (i32, i32) {
    %c0_i32 = arith.constant 0 : i32
    %c0_i32_0 = arith.constant 0 : i32
    %c0_i32_1 = arith.constant 0 : i32
    return %c0_i32, %c0_i32_0 : i32, i32
  }
  func.func @transform_4(%arg0: i32, %arg1: i32) -> (i32, i32) {
    %c0_i32 = arith.constant 0 : i32
    %c0_i32_0 = arith.constant 0 : i32
    %c0_i32_1 = arith.constant 0 : i32
    return %c0_i32, %c0_i32_0 : i32, i32
  }
  func.func @transform_5(%arg0: i32, %arg1: i32) -> (i32, i32) {
    %c0_i32 = arith.constant 0 : i32
    %c0_i32_0 = arith.constant 0 : i32
    return %arg0, %c0_i32 : i32, i32
  }
}

</mosaic_0001>

<bundles_post_ra>
// kernel: tpu_custom_call.1
= control target key start
LH: loop header
LB: loop body
LE: loop exit
PB: predicated region body
PF: predicated region fallthrough
CT: control target
= control target key end

     0   :  { %s2320_s0 = inlined_call_operand.hbm [shape: bf16[256,256], index: 0, kind: input, shape index: {}]   ;;  %s2321_s1 = inlined_call_operand.hbm [shape: bf16[256,128], index: 1, kind: input, shape index: {}]   ;;  %s2322_s2 = inlined_call_operand.hbm [shape: f32[256,128], index: 2, kind: input, shape index: {}]   ;;  %s2323_s3 = inlined_call_operand.hbm [shape: f32[256,128], index: 3, kind: input, shape index: {}]   ;;  %s2324_s4 = inlined_call_operand.vmem [shape: f32[1,128], index: 4, kind: input, shape index: {}]   ;;  %s2325_s5 = inlined_call_operand.hbm [shape: f32[256,128], index: 5, kind: output, shape index: {}]  }
   0x1   :  { %2341 = sst [smem:[#allocation23_spill]] %s2320_s0 }
   0x2   :  { %2342 = sst [smem:[#allocation24_spill]] %s2321_s1 }
   0x3   :  { %2343 = sst [smem:[#allocation25_spill]] %s2324_s4 }
   0x4   :  { %2344 = sst [smem:[#allocation26_spill]] %s2325_s5 }
   0x5   :  { %10 = vsyncpa [#allocation4], 0 }
   0x6   :  { %12 = vsyncpa [#allocation4 + $0x1], 0 }
   0x7   :  { %13 = vsyncpa [#allocation7], 0 }
   0x8   :  { %15 = vsyncpa [#allocation7 + $0x1], 0 }
   0x9   :  { %16 = vsyncpa [#allocation10], 0 }
   0xa   :  { %17 = vsyncpa [#allocation5], 0 }
   0xb   :  { %19 = vsyncpa [#allocation5 + $0x1], 0  ;;  %s1785_s18 = smov 0   ;;  %s1787_s19 = smov 0  }
   0xc   :  { %s1789_s20 = smov 0   ;;  %s1791_s21 = smov 0  }
   0xd   :  { %s1793_s22 = smov 0   ;;  %s1795_s23 = smov 0  }
   0xe   :  { %s1797_s24 = smov 0   ;;  %s1799_s25 = smov 0  }
   0xf   :  { %s1801_s26 = smov 0   ;;  %s1803_s27 = smov 0  }
  0x10   :  { %s1805_s28 = smov 0   ;;  %s1807_s29 = smov 0  }
  0x11   :  { %s1809_s30 = smov 0   ;;  %s1811_s6 = smov 0  }
  0x12 LB: > { %2345 = sst [smem:[#allocation17_spill]] %s1709_s23  ;;  %s34_s7 = sadd.s32 1, %s1733_s29  ;;  %s1741_s6 = sphi %s1811_s6, %s25_s6   ;;  %s1737_s30 = sphi %s1809_s30, %s2408_s30   ;;  %s1733_s29 = sphi %s1807_s29, %s2407_s29   ;;  %s1729_s28 = sphi %s1805_s28, %s2406_s28   ;;  %s1725_s27 = sphi %s1803_s27, %s2405_s27   ;;  %s1721_s26 = sphi %s1801_s26, %s2404_s26   ;;  %s1717_s25 = sphi %s1799_s25, %s2403_s25   ;;  %s1713_s24 = sphi %s1797_s24, %s2402_s24   ;;  %s1709_s23 = sphi %s1795_s23, %s2394_s23   ;;  %s1705_s22 = sphi %s1793_s22, %s2401_s22   ;;  %s1701_s21 = sphi %s1791_s21, %s2400_s21   ;;  %s1697_s20 = sphi %s1789_s20, %s2399_s20   ;;  %s1693_s19 = sphi %s1787_s19, %s2398_s19   ;;  %s1689_s18 = sphi %s1785_s18, %s2397_s18  }
  0x13   : > { %2346 = sst [smem:[#allocation18_spill]] %s1725_s27  ;;  %s37_s8 = sadd.s32 1, %s1737_s30 }
  0x14   : > { %2347 = sst [smem:[#allocation19_spill]] %s1729_s28  ;;  %p35_p0 = scmp.ge.s32.totalorder %s34_s7, 2 }
  0x15   : > { %p2330_p1 = scmp.eq.s32.totalorder %s1741_s6, 0  ;;  %s72_s9 = sadd.s32 1, %s1709_s23 }
  0x16   : > { %p79_p2 = scmp.ne.s32.totalorder %s1709_s23, %s1705_s22  ;;  %s2410_s7 = smov (%p35_p0, %s34_s7), 0 }
  0x17   : > { %2348 = sst [smem:[#allocation20_spill]] %s2410_s7  ;;  %s2412_s8 = smov (!%p35_p0, %s37_s8), %s1737_s30 }
  0x18   : > { %s42_s10 = ssub.s32 %s1733_s29, %s2410_s7  ;;  %p1868_p3 = por %p79_p2, %p2330_p1 }
  0x19   : > { %p39_p4 = scmp.ge.s32.totalorder %s2412_s8, 2  ;;  %p70_p5 = scmp.eq.s32.totalorder %s42_s10, 0 }
  0x1a   : > { %p2329_p7 = scmp.lt.s32.totalorder %s1741_s6, 4  ;;  %s242_s16 = sand.u32 1, %s1741_s6  }
  0x1b   : > { %s2414_s8 = smov (%p39_p4, %s2412_s8), 0  ;;  %s244_s17 = sand.u32 1, %s1709_s23  }
  0x1c   : > { %2350 = sst [smem:[#allocation21_spill]] %s2414_s8  ;;  %s1881_s13 = ssub.s32 %s1737_s30, %s2414_s8 }
  0x1d   : > { %s1877_s12 = scalar_select %p70_p5, %s1709_s23, %s72_s9  }
  0x1e   : > { %s43_s14 = sor.u32 %s42_s10, %s1881_s13  ;;  %s1063_s7 = sshll.u32 %s244_s17, 6 }
  0x1f   : > { %2351 = sst [smem:[#allocation22_spill]] %s1877_s12  ;;  %p1886_p9 = scmp.eq.s32.totalorder %s43_s14, 0 }
  0x20   : > { %s1100_s5 = sshll.u32 %s1733_s29, 10  ;;  %s2353_s1 = sld [smem:[#allocation24_spill]] }
  0x21   : > { %s2352_s15 = scalar_select %p1886_p9, 1, 0 }
  0x22   : > { %s246_s8 = scalar_lea.vmem [#allocation6], %s1063_s7  ;;  %p1902_p10 = pnand %p2329_p7, %p1868_p3 }
  0x23   : > { %s253_s10 = sshll.u32 %s246_s8, 4  ;;  %s1908_s17 = scalar_lea.sflag [#allocation7], %s242_s16  ;;  %s1906_s10 = int_to_ptr.vmem [resolvable:$true] %s253_s10 }
  0x24   : > { %p1467_p12 = pneg %p1902_p10 }
  0x26   : > { %s1896_s9 = scalar_lea.hbm %s2353_s1, %s1100_s5  ;;  %s1470_s7 = scalar_lea.hbm %s2353_s1, 2048 }
  0x27   : > { %s1465_s4 = scalar_lea.hbm %s1896_s9, 1024  ;;  %p1471_p2 = scmp.lt.u32.totalorder %s1896_s9, %s2353_s1 }
  0x28   : > { %p1466_p11 = scmp.ne.s32.totalorder %s1896_s9, %s1465_s4  ;;  %p1472_p3 = scmp.lt.u32.totalorder %s1470_s7, %s1465_s4 }
  0x29   : > { %p1474_p5 = scmp.lt.u32.totalorder %s1465_s4, %s1896_s9 }
  0x2a   : > { %p1468_p13 = pnand %p1467_p12, %p1466_p11  ;;  %p1473_p4 = por %p1472_p3, %p1471_p2 }
  0x2c   : > { %p1469_p0 = pneg %p1468_p13  ;;  %p1475_p8 = por %p1474_p5, %p1473_p4 }
  0x2e   : > { %p1476_p7 = pnand %p1475_p8, %p1469_p0 }
  0x30   : > { %1479 = shalt.err (!%p1476_p7)
}
  0x31   : > { %s1480_s16 = scalar_lea.vmem %s1906_s10, 1024  ;;  %s1743_s5 = smov [#allocation6]  }
  0x32   : > { %p1481_p11 = scmp.ne.s32.totalorder %s1906_s10, %s1480_s16  ;;  %s1485_s28 = sshll.u32 %s1743_s5, 4  ;;  %s1486_s28 = int_to_ptr.vmem [resolvable:$false] %s1485_s28 }
  0x33   : > { %s1487_s8 = scalar_lea.vmem %s1486_s28, 2048  ;;  %p1488_p6 = scmp.lt.s32.totalorder %s1906_s10, %s1486_s28 }
  0x34   : > { %p1483_p13 = pnand %p1481_p11, %p1467_p12  ;;  %p1489_p2 = scmp.lt.s32.totalorder %s1487_s8, %s1480_s16 }
  0x36   : > { %p1484_p1 = pneg %p1483_p13  ;;  %p1490_p3 = por %p1489_p2, %p1488_p6 }
  0x38   : > { %p1491_p4 = pnand %p1490_p3, %p1484_p1 }
  0x3a   : > { %1494 = shalt.err (!%p1491_p4)
}
  0x3b   : > { %s2331_s4 = smov 64   ;;  %s2332_s7 = smov 4  }
  0x3c   : > { %1317 = dma.hbm_to_vmem [thread:$0]  (!%p1902_p10), %s1896_s9, 1024, %s1906_s10, %s1908_s17, %s2331_s4, %s2331_s4, %s2332_s7  }
  0x3d   : > { %s1940_s11 = sadd.s32 4294967295, %s1741_s6   ;;  %p1056_p1 = scmp.ge.s32.totalorder %s1741_s6, 1 }
  0x3e   : > { %p2333_p6 = scmp.eq.s32.totalorder %s1940_s11, 0  ;;  %p190_p8 = scmp.lt.s32.totalorder %s1741_s6, 5 }
  0x3f   : > { %p2355_p12 = scmp.ne.s32.totalorder %s1705_s22, %s1701_s21  ;;  %s1746_s9 = smov [#allocation9]  }
  0x40   : > { %p1955_p5 = pnand %p1056_p1, %p190_p8  ;;  %s202_s10 = sshll.u32 %s1746_s9, 4  ;;  %s203_s10 = int_to_ptr.vmem [resolvable:$true] %s202_s10 }
  0x41   : > { %p1951_p0 = por %p2355_p12, %p2333_p6  ;;  %s1495_s8 = scalar_lea.hbm %s2323_s3, 4096 }
  0x42   : > { %s2357_s14 = scalar_select %p1955_p5, 1, 0 }
  0x43   : > { %s2356_s16 = scalar_select %p1951_p0, 1, 0 }
  0x44   : > { %p1307_p10 = pneg %p1955_p5  ;;  %p1496_p13 = scmp.ne.s32.totalorder %s2323_s3, %s1495_s8 }
  0x45   : > { %p1502_p1 = scmp.lt.u32.totalorder %s1495_s8, %s2323_s3 }
  0x46   : > { %p1963_p11 = pnand %p1307_p10, %p2333_p6 }
  0x48   : > { %p1497_p2 = pneg %p1963_p11 }
  0x4a   : > { %p1498_p3 = pnand %p1497_p2, %p1496_p13 }
  0x4c   : > { %p1499_p4 = pneg %p1498_p3 }
  0x4e   : > { %p1504_p8 = pnand %p1502_p1, %p1499_p4 }
  0x50   : > { %1507 = shalt.err (!%p1504_p8)
}
  0x51   : > { %s1508_s12 = scalar_lea.vmem %s203_s10, 4096  ;;  %p1516_p6 = scmp.lt.s32.totalorder %s203_s10, %s203_s10 }
  0x52   : > { %p1509_p12 = scmp.ne.s32.totalorder %s203_s10, %s1508_s12  ;;  %p1517_p0 = scmp.lt.s32.totalorder %s1508_s12, %s1508_s12 }
  0x54   : > { %p1511_p10 = pnand %p1509_p12, %p1497_p2  ;;  %p1518_p5 = por %p1517_p0, %p1516_p6 }
  0x56   : > { %p1512_p7 = pneg %p1511_p10 }
  0x58   : > { %p1519_p9 = pnand %p1518_p5, %p1512_p7 }
  0x5a   : > { %1522 = shalt.err (!%p1519_p9)
}
  0x5b   : > { %s2338_s4 = smov 128   ;;  %s2337_s1 = smov 8  }
  0x5c   : > { %1310 = dma.hbm_to_vmem [thread:$0]  (!%p1963_p11), %s2323_s3, 4096, %s203_s10, [#allocation10], %s2338_s4, %s2338_s4, %s2337_s1  }
  0x5d   : > { %s46_s21 = sadd.s32 1, %s1721_s26  ;;  %p53_p9 = scmp.ne.s32.totalorder %s1721_s26, %s1717_s25 }
  0x5e   : > { %p2359_p6 = scmp.ne.s32.totalorder %s2352_s15, 0  ;;  %p2360_p7 = scmp.eq.s32.totalorder %s1741_s6, 0 }
  0x5f   : > { %p59_p5 = scmp.ne.s32.totalorder %s1717_s25, %s1713_s24  ;;  %s219_s8 = sand.u32 1, %s1721_s26  }
  0x60   : > { %s1992_s28 = scalar_select %p2359_p6, %s1721_s26, %s46_s21  }
  0x61   : > { %p55_p0 = por %p2360_p7, %p53_p9  ;;  %s1099_s9 = sshll.u32 %s1737_s30, 5 }
  0x62   : > { %p2361_p13 = scmp.eq.s32.totalorder %s1940_s11, 0  ;;  %s1059_s23 = sshll.u32 %s219_s8, 6 }
  0x63   : > { %s229_s27 = sadd.s32 %s1733_s29, %s1099_s9  ;;  %s2363_s0 = sld [smem:[#allocation23_spill]] }
  0x64   : > { %p2002_p2 = por %p2361_p13, %p59_p5  ;;  %s1062_s12 = sshll.u32 %s229_s27, 6 }
  0x65   : > { %s223_s24 = scalar_lea.vmem [#allocation3], %s1059_s23  ;;  %p2364_p11 = scmp.lt.s32.totalorder %s1741_s6, 4 }
  0x66   : > { %s232_s15 = sshll.u32 %s223_s24, 4  ;;  %s2020_s27 = scalar_lea.sflag [#allocation4], %s219_s8  ;;  %s2012_s15 = int_to_ptr.vmem [resolvable:$true] %s232_s15 }
  0x67   : > { %p2016_p3 = pnand %p2364_p11, %p55_p0 }
  0x69   : > { %s2010_s1 = scalar_lea.hbm %s2363_s0, %s1062_s12  ;;  %p1525_p1 = pneg %p2016_p3 }
  0x6a   : > { %s1523_s9 = scalar_lea.hbm %s2010_s1, 1024  ;;  %s1528_s10 = scalar_lea.hbm %s2363_s0, 4096 }
  0x6b   : > { %p1524_p4 = scmp.ne.s32.totalorder %s2010_s1, %s1523_s9  ;;  %p1529_p10 = scmp.lt.u32.totalorder %s2010_s1, %s2363_s0 }
  0x6c   : > { %p1530_p9 = scmp.lt.u32.totalorder %s1528_s10, %s1523_s9  ;;  %p1532_p7 = scmp.lt.u32.totalorder %s1523_s9, %s2010_s1 }
  0x6d   : > { %p1526_p8 = pnand %p1525_p1, %p1524_p4 }
  0x6e   : > { %p1531_p6 = por %p1530_p9, %p1529_p10 }
  0x6f   : > { %p1527_p12 = pneg %p1526_p8 }
  0x70   : > { %p1533_p0 = por %p1532_p7, %p1531_p6 }
  0x72   : > { %p1534_p5 = pnand %p1533_p0, %p1527_p12 }
  0x74   : > { %1537 = shalt.err (!%p1534_p5)
}
  0x75   : > { %s1538_s8 = scalar_lea.vmem %s2012_s15, 1024  ;;  %s1749_s23 = smov [#allocation3]  }
  0x76   : > { %p1539_p13 = scmp.ne.s32.totalorder %s2012_s15, %s1538_s8  ;;  %s1543_s12 = sshll.u32 %s1749_s23, 4  ;;  %s1544_s12 = int_to_ptr.vmem [resolvable:$false] %s1543_s12 }
  0x77   : > { %s1545_s7 = scalar_lea.vmem %s1544_s12, 2048  ;;  %p1546_p8 = scmp.lt.s32.totalorder %s2012_s15, %s1544_s12 }
  0x78   : > { %p1541_p11 = pnand %p1539_p13, %p1525_p1  ;;  %p1547_p10 = scmp.lt.s32.totalorder %s1545_s7, %s1538_s8 }
  0x7a   : > { %p1542_p4 = pneg %p1541_p11  ;;  %p1548_p9 = por %p1547_p10, %p1546_p8 }
  0x7c   : > { %p1549_p6 = pnand %p1548_p9, %p1542_p4 }
  0x7e   : > { %1552 = shalt.err (!%p1549_p6)
}
  0x7f   : > { %s2366_s9 = smov 4   ;;  %s2367_s10 = smov 64  }
  0x80   : > { %1314 = dma.hbm_to_vmem [thread:$0]  (!%p2016_p3), %s2010_s1, 1024, %s2012_s15, %s2020_s27, %s2338_s4, %s2367_s10, %s2366_s9  }
  0x81   : > { %s1055_s21 = sadd.s32 4294967294, %s1741_s6   ;;  %s98_s24 = sadd.s32 1, %s1697_s20 }
  0x82   : > { %p105_p1 = scmp.ne.s32.totalorder %s1697_s20, %s1693_s19  ;;  %p2368_p12 = scmp.eq.s32.totalorder %s1881_s13, 0 }
  0x83   : > { %p2369_p7 = scmp.eq.s32.totalorder %s1741_s6, 0  ;;  %p111_p5 = scmp.ne.s32.totalorder %s1693_s19, %s1689_s18 }
  0x84   : > { %s2058_s8 = scalar_select %p2368_p12, %s1697_s20, %s98_s24  }
  0x85   : > { %p2062_p0 = por %p105_p1, %p2369_p7  ;;  %p2371_p13 = scmp.eq.s32.totalorder %s1940_s11, 3 }
  0x86   : > { %p183_p3 = scmp.eq.s32.totalorder %s1055_s21, 3  ;;  %p2373_p4 = scmp.eq.s32.totalorder %s1940_s11, 0 }
  0x87   : > { %p2070_p11 = por %p2371_p13, %p105_p1  ;;  %s265_s13 = sand.u32 1, %s1697_s20  }
  0x88   : > { %p2076_p8 = por %p111_p5, %p2373_p4  ;;  %p2081_p10 = por %p183_p3, %p111_p5 }
  0x89   : > { %s2372_s12 = scalar_select %p2070_p11, 1, 0 }
  0x8a   : > { %s2374_s1 = scalar_select %p2076_p8, 1, 0 }
  0x8b   : > { %s2375_s15 = scalar_select %p2081_p10, 1, 0 }
  0x8c   : > { %s1066_s27 = sshll.u32 %s265_s13, 7  ;;  %s1101_s7 = sshll.u32 %s1737_s30, 11 }
  0x8d   : > { %s2089_s24 = scalar_lea.hbm %s2322_s2, %s1101_s7  ;;  %s267_s21 = scalar_lea.vmem [#allocation8], %s1066_s27 }
  0x8e   : > { %s274_s4 = sshll.u32 %s267_s21, 4  ;;  %p2376_p9 = scmp.lt.s32.totalorder %s1741_s6, 4  ;;  %s2091_s4 = int_to_ptr.vmem [resolvable:$true] %s274_s4 }
  0x8f   : > { %s1553_s13 = scalar_lea.hbm %s2089_s24, 2048  ;;  %s1558_s9 = scalar_lea.hbm %s2322_s2, 4096 }
  0x90   : > { %p2097_p6 = pnand %p2376_p9, %p2062_p0  ;;  %p1554_p1 = scmp.ne.s32.totalorder %s2089_s24, %s1553_s13 }
  0x91   : > { %p1559_p0 = scmp.lt.u32.totalorder %s2089_s24, %s2322_s2  ;;  %p1560_p13 = scmp.lt.u32.totalorder %s1558_s9, %s1553_s13 }
  0x92   : > { %p1555_p12 = pneg %p2097_p6  ;;  %p1562_p4 = scmp.lt.u32.totalorder %s1553_s13, %s2089_s24 }
  0x93   : > { %p1561_p3 = por %p1560_p13, %p1559_p0 }
  0x94   : > { %p1556_p7 = pnand %p1555_p12, %p1554_p1 }
  0x95   : > { %p1563_p9 = por %p1562_p4, %p1561_p3 }
  0x96   : > { %p1557_p5 = pneg %p1556_p7 }
  0x98   : > { %p1564_p10 = pnand %p1563_p9, %p1557_p5 }
  0x9a   : > { %1567 = shalt.err (!%p1564_p10)
}
  0x9b   : > { %s1568_s21 = scalar_lea.vmem %s2091_s4, 2048  ;;  %s1750_s27 = smov [#allocation8]  }
  0x9c   : > { %p1569_p1 = scmp.ne.s32.totalorder %s2091_s4, %s1568_s21  ;;  %s1573_s7 = sshll.u32 %s1750_s27, 4  ;;  %s1574_s7 = int_to_ptr.vmem [resolvable:$false] %s1573_s7 }
  0x9d   : > { %s1575_s23 = scalar_lea.vmem %s1574_s7, 4096  ;;  %p1576_p8 = scmp.lt.s32.totalorder %s2091_s4, %s1574_s7 }
  0x9e   : > { %p1571_p7 = pnand %p1569_p1, %p1555_p12  ;;  %p1577_p0 = scmp.lt.s32.totalorder %s1575_s23, %s1568_s21 }
  0xa0   : > { %p1572_p11 = pneg %p1571_p7  ;;  %p1578_p13 = por %p1577_p0, %p1576_p8 }
  0xa2   : > { %p1579_p3 = pnand %p1578_p13, %p1572_p11 }
  0xa4   : > { %1582 = shalt.err (!%p1579_p3)
}
  0xa5   : > { %s2378_s13 = smov 8   ;;  %s2379_s9 = smov 128  }
  0xa6   : > { %1320 = dma.hbm_to_vmem [thread:$0]  (!%p2097_p6), %s2089_s24, 2048, %s2091_s4, %s1908_s17, %s2379_s9, %s2379_s9, %s2378_s13  }
  0xa7   : > { %p2380_p10 = scmp.ne.s32.totalorder %s2357_s14, 0 }
  0xa8   : > { %s288_s10 = sand.u32 (!%p2380_p10), 1, %s1717_s25  }
  0xa9   : > { %286 = sbr.rel (%p2380_p10) target bundleno = 753 (0x2f1), region = 40  ;;  %s1070_s27 = sshll.u32 (!%p2380_p10), %s288_s10, 6 }
  0xaa   : > { %s289_s21 = scalar_lea.sflag (!%p2380_p10), [#allocation4], %s288_s10  ;;  %s2133_s7 = scalar_lea.vmem (!%p2380_p10), [#allocation3], %s1070_s27 }
  0xb0   : > { %1668 = dma.done.wait (%p2002_p2), %s289_s21, 1024  }
  0xb1   : > { %1670 = vsyncadd (%p2002_p2), %s289_s21, 4294966272  ;;  %s297_s0 = sand.u32 1, %s1940_s11   ;;  %s299_s17 = sand.u32 1, %s1705_s22  }
  0xb2   : > { %s1071_s4 = sshll.u32 %s299_s17, 6  ;;  %s298_s14 = scalar_lea.sflag [#allocation7], %s297_s0 }
  0xb3   : > { %s2141_s24 = scalar_lea.vmem [#allocation6], %s1071_s4  ;;  %p2381_p11 = scmp.ne.s32.totalorder %s2356_s16, 0 }
  0xb5   : > { %1672 = dma.done.wait (%p2381_p11), %s298_s14, 1024  }
  0xb6   : > { %1674 = vsyncadd (%p2381_p11), %s298_s14, 4294966272  ;;  %s308_s23 = sand.u32 1, %s1693_s19   ;;  %p2382_p2 = scmp.ne.s32.totalorder %s2374_s1, 0 }
  0xb7   : > { %s1072_s5 = sshll.u32 %s308_s23, 7 }
  0xb8   : > { %s2150_s13 = scalar_lea.vmem [#allocation8], %s1072_s5 }
  0xb9   : > { %1676 = dma.done.wait (%p2382_p2), %s298_s14, 2048  }
  0xba   : > { %1678 = vsyncadd (%p2382_p2), %s298_s14, 4294965248  ;;  %p2383_p8 = scmp.eq.s32.totalorder %s1940_s11, 0 }
  0xbc   : > { %1680 = dma.done.wait (%p2383_p8), [#allocation10], 4096   ;;  %p2384_p6 = pmov %p2383_p8 }
  0xbd   : > { %s2160_s16 = scalar_lea.vmem [#allocation11], %s1072_s5  ;;  %s2385_s9 = sld [smem:[#allocation18_spill]] }
  0xbe   : > { %1682 = vsyncadd (%p2384_p6), [#allocation10], 4294963200 }
  0xc3   : > { %p1075_p12 = scmp.ne.s32.totalorder %s2385_s9, 0 }
  0xc4   : > { %v1751_v0 = vmov (!%p1075_p12), 0.0  }
  0xc5   : > { %359 = sbr.rel (%p1075_p12) target bundleno = 205 (0xcd), region = 60  ;;  %360 = vst [vmem:[#allocation2] sm:$0xff] (!%p1075_p12), %v1751_v0  ;;  %361 = vst [vmem:[#allocation2 + $0x8] sm:$0xff] (!%p1075_p12), %v1751_v0 }
  0xc6   : > { %362 = vst [vmem:[#allocation2 + $0x10] sm:$0xff] (!%p1075_p12), %v1751_v0  ;;  %363 = vst [vmem:[#allocation2 + $0x18] sm:$0xff] (!%p1075_p12), %v1751_v0 }
  0xc7   : > { %364 = vst [vmem:[#allocation2 + $0x20] sm:$0xff] (!%p1075_p12), %v1751_v0  ;;  %365 = vst [vmem:[#allocation2 + $0x28] sm:$0xff] (!%p1075_p12), %v1751_v0 }
  0xc8   : > { %366 = vst [vmem:[#allocation2 + $0x30] sm:$0xff] (!%p1075_p12), %v1751_v0  ;;  %367 = vst [vmem:[#allocation2 + $0x38] sm:$0xff] (!%p1075_p12), %v1751_v0 }
  0xc9   : > { %368 = vst [vmem:[#allocation2 + $0x40] sm:$0xff] (!%p1075_p12), %v1751_v0  ;;  %369 = vst [vmem:[#allocation2 + $0x48] sm:$0xff] (!%p1075_p12), %v1751_v0 }
  0xca   : > { %370 = vst [vmem:[#allocation2 + $0x50] sm:$0xff] (!%p1075_p12), %v1751_v0  ;;  %371 = vst [vmem:[#allocation2 + $0x58] sm:$0xff] (!%p1075_p12), %v1751_v0 }
  0xcb   : > { %372 = vst [vmem:[#allocation2 + $0x60] sm:$0xff] (!%p1075_p12), %v1751_v0  ;;  %373 = vst [vmem:[#allocation2 + $0x68] sm:$0xff] (!%p1075_p12), %v1751_v0 }
  0xcc   : > { %374 = vst [vmem:[#allocation2 + $0x70] sm:$0xff] %v1751_v0  ;;  %375 = vst [vmem:[#allocation2 + $0x78] sm:$0xff] %v1751_v0 }
  0xcd PF: > { %v1449_v1 = vld [vmem:[%s2141_s24] sm:$0xff]   ;;  %v1450_v2 = vld [vmem:[%s2141_s24 + $0x8] sm:$0xff]   ;;  %v1451_v3 = vld [vmem:[%s2141_s24 + $0x10] sm:$0xff]   ;;  %s2386_s11 = sld [smem:[#allocation18_spill]] }
  0xce   : > { %1199 = vmatprep.subr.bf16.mxu0 %v1449_v1  ;;  %1263 = vmatprep.subr.bf16.mxu1 %v1449_v1  ;;  %v1452_v4 = vld [vmem:[%s2141_s24 + $0x18] sm:$0xff]   ;;  %v1457_v5 = vld [vmem:[%s2133_s7] sm:$0xff]   ;;  %v1454_v8 = vld [vmem:[%s2141_s24 + $0x28] sm:$0xff]  }
  0xcf   : > { %1200 = vmatpush3.bf16.msra.mxu0 %v1449_v1  ;;  %1271 = vmatpush3.bf16.msra.mxu1 %v1449_v1  ;;  %v1458_v6 = vld [vmem:[%s2133_s7 + $0x20] sm:$0xff]   ;;  %v1455_v9 = vld [vmem:[%s2141_s24 + $0x30] sm:$0xff]   ;;  %v1456_v10 = vld [vmem:[%s2141_s24 + $0x38] sm:$0xff]  }
  0xd0   : > { %1201 = vmatprep.subr.bf16.mxu0 %v1450_v2  ;;  %1264 = vmatprep.subr.bf16.mxu1 %v1450_v2  ;;  %v1453_v7 = vld [vmem:[%s2141_s24 + $0x20] sm:$0xff]   ;;  %v1459_v11 = vld [vmem:[%s2133_s7 + $0x8] sm:$0xff]   ;;  %v1461_v13 = vld [vmem:[%s2133_s7 + $0x10] sm:$0xff]  }
  0xd1   : > { %1215 = vmatprep.mubr.bf16.mxu0 %v1457_v5  ;;  %1223 = vmatprep.mubr.bf16.mxu1 %v1458_v6  ;;  %v1460_v12 = vld [vmem:[%s2133_s7 + $0x28] sm:$0xff]   ;;  %v1462_v14 = vld [vmem:[%s2133_s7 + $0x30] sm:$0xff]   ;;  %v1463_v15 = vld [vmem:[%s2133_s7 + $0x18] sm:$0xff]  }
  0xd2   : > { %v1464_v16 = vld [vmem:[%s2133_s7 + $0x38] sm:$0xff]   ;;  %v378_v17 = vld [vmem:[#allocation2 + $0x10] sm:$0xff]  ;;  %v376_v19 = vld [vmem:[#allocation2] sm:$0xff] }
  0xd3   : > { %1202 = vmatpush3.bf16.msra.mxu0 %v1450_v2  ;;  %1272 = vmatpush3.bf16.msra.mxu1 %v1450_v2  ;;  %v386_v18 = vld [vmem:[#allocation2 + $0x50] sm:$0xff]  ;;  %v384_v20 = vld [vmem:[#allocation2 + $0x40] sm:$0xff]  ;;  %v379_v23 = vld [vmem:[#allocation2 + $0x18] sm:$0xff]  ;;  %p1092_p5 = scmp.ne.s32.totalorder %s2386_s11, 1 }
  0xd4   : > { %1203 = vmatprep.subr.bf16.mxu0 %v1451_v3  ;;  %1265 = vmatprep.subr.bf16.mxu1 %v1451_v3  ;;  %v387_v24 = vld [vmem:[#allocation2 + $0x58] sm:$0xff]  ;;  %v377_v29 = vld [vmem:[#allocation2 + $0x8] sm:$0xff]  ;;  %v382_v41 = vld [vmem:[#allocation2 + $0x30] sm:$0xff]  ;;  %s2387_s27 = sld [smem:[#allocation25_spill]] (!%p1092_p5) }
  0xd5   : > { %v385_v30 = vld [vmem:[#allocation2 + $0x48] sm:$0xff]  ;;  %v390_v42 = vld [vmem:[#allocation2 + $0x70] sm:$0xff]  ;;  %v380_v43 = vld [vmem:[#allocation2 + $0x20] sm:$0xff] }
  0xd6   : > { %v388_v44 = vld [vmem:[#allocation2 + $0x60] sm:$0xff]  ;;  %v383_v47 = vld [vmem:[#allocation2 + $0x38] sm:$0xff]  ;;  %v381_v53 = vld [vmem:[#allocation2 + $0x28] sm:$0xff] }
  0xd7   : > { %1204 = vmatpush3.bf16.msra.mxu0 %v1451_v3  ;;  %1273 = vmatpush3.bf16.msra.mxu1 %v1451_v3  ;;  %v391_v48 = vld [vmem:[#allocation2 + $0x78] sm:$0xff]  ;;  %v389_v54 = vld [vmem:[#allocation2 + $0x68] sm:$0xff]  ;;  %v701_v1 = vld [vmem:[#allocation9 + $0x80] sm:$0xff] (!%p1092_p5) }
  0xd8   : > { %1205 = vmatprep.subr.bf16.mxu0 %v1452_v4  ;;  %1266 = vmatprep.subr.bf16.mxu1 %v1452_v4  ;;  %v702_v2 = vld [vmem:[#allocation9 + $0x88] sm:$0xff] (!%p1092_p5)  ;;  %v685_v3 = vld [vmem:[#allocation9] sm:$0xff] (!%p1092_p5)  ;;  %v703_v6 = vld [vmem:[#allocation9 + $0x90] sm:$0xff] (!%p1092_p5) }
  0xd9   : > { %v686_v5 = vld [vmem:[#allocation9 + $0x8] sm:$0xff] (!%p1092_p5) }
  0xdb   : > { %1206 = vmatpush3.bf16.msra.mxu0 %v1452_v4  ;;  %1274 = vmatpush3.bf16.msra.mxu1 %v1452_v4  ;;  %v1231_v4 = vpack.c.bf16 (!%p1092_p5), %v702_v2, %v701_v1 }
  0xdc   : > { %1207 = vmatprep.subr.bf16.mxu0 %v1453_v7  ;;  %1267 = vmatprep.subr.bf16.mxu1 %v1453_v7 }
  0xdf   : > { %1208 = vmatpush3.bf16.msra.mxu0 %v1453_v7  ;;  %1275 = vmatpush3.bf16.msra.mxu1 %v1453_v7  ;;  %v704_v7 = vld [vmem:[#allocation9 + $0x98] sm:$0xff] (!%p1092_p5) }
  0xe0   : > { %1209 = vmatprep.subr.bf16.mxu0 %v1454_v8  ;;  %1268 = vmatprep.subr.bf16.mxu1 %v1454_v8 }
  0xe3   : > { %1210 = vmatpush3.bf16.msra.mxu0 %v1454_v8  ;;  %1276 = vmatpush3.bf16.msra.mxu1 %v1454_v8  ;;  %v1233_v8 = vpack.c.bf16 (!%p1092_p5), %v686_v5, %v685_v3  ;;  %v657_v3 = vld [vmem:[%s2150_s13 + $0x20] sm:$0xff] (!%p1092_p5) }
  0xe4   : > { %1211 = vmatprep.subr.bf16.mxu0 %v1455_v9  ;;  %1269 = vmatprep.subr.bf16.mxu1 %v1455_v9 }
  0xe7   : > { %1212 = vmatpush3.bf16.msra.mxu0 %v1455_v9  ;;  %1277 = vmatpush3.bf16.msra.mxu1 %v1455_v9  ;;  %v1235_v9 = vpack.c.bf16 (!%p1092_p5), %v704_v7, %v703_v6  ;;  %v658_v7 = vld [vmem:[%s2150_s13 + $0x28] sm:$0xff] (!%p1092_p5) }
  0xe8   : > { %1213 = vmatprep.subr.bf16.mxu0 %v1456_v10  ;;  %1270 = vmatprep.subr.bf16.mxu1 %v1456_v10 }
  0xeb   : > { %1214 = vmatpush3.bf16.msra.mxu0 %v1456_v10  ;;  %1278 = vmatpush3.bf16.msra.mxu1 %v1456_v10  ;;  %v687_v10 = vld [vmem:[#allocation9 + $0x10] sm:$0xff] (!%p1092_p5) }
  0xec   : > { %1232 = vmatprep.subr.bf16.mxu0 (!%p1092_p5), %v1231_v4  ;;  %1279 = vmatprep.subr.bf16.mxu1 (!%p1092_p5), %v1231_v4  ;;  %v665_v4 = vld [vmem:[%s2150_s13 + $0x60] sm:$0xff] (!%p1092_p5) }
  0xee   : > { %1216 = vmatmul.mubr.bf16.vlgmr.msra.gmra.mrb[0].mxu0 %v1459_v11  ;;  %1224 = vmatmul.mubr.bf16.vlgmr.msra.gmra.mrb[0].mxu1 %v1460_v12  ;;  %v688_v11 = vld [vmem:[#allocation9 + $0x18] sm:$0xff] (!%p1092_p5)  ;;  %v705_v12 = vld [vmem:[#allocation9 + $0xa0] sm:$0xff] (!%p1092_p5) }
  0xef   : > { %1219 = vmatprep.mubr.bf16.mxu0 %v1461_v13  ;;  %1227 = vmatprep.mubr.bf16.mxu1 %v1462_v14  ;;  %v706_v13 = vld [vmem:[#allocation9 + $0xa8] sm:$0xff] (!%p1092_p5)  ;;  %v1237_v14 = vpack.c.bf16 (!%p1092_p5), %v688_v11, %v687_v10  ;;  %v659_v11 = vld [vmem:[%s2150_s13 + $0x30] sm:$0xff] (!%p1092_p5) }
  0xf0   : > { %1234 = vmatpush3.bf16.msra.mxu0 (!%p1092_p5), %v1233_v8  ;;  %1287 = vmatpush3.bf16.msra.mxu1 (!%p1092_p5), %v1233_v8  ;;  %v666_v8 = vld [vmem:[%s2150_s13 + $0x68] sm:$0xff] (!%p1092_p5) }
  0xf1   : > { %1236 = vmatprep.subr.bf16.mxu0 (!%p1092_p5), %v1235_v9  ;;  %1280 = vmatprep.subr.bf16.mxu1 (!%p1092_p5), %v1235_v9 }
  0xf4   : > { %1238 = vmatpush3.bf16.msra.mxu0 (!%p1092_p5), %v1237_v14  ;;  %1288 = vmatpush3.bf16.msra.mxu1 (!%p1092_p5), %v1237_v14 }
  0xf6   : > { %1220 = vmatmul.mubr.bf16.gmra.mrb[4].mxu0 %v1463_v15  ;;  %1228 = vmatmul.mubr.bf16.gmra.mrb[4].mxu1 %v1464_v16  ;;  %v1239_v15 = vpack.c.bf16 (!%p1092_p5), %v706_v13, %v705_v12  ;;  %v689_v16 = vld [vmem:[#allocation9 + $0x20] sm:$0xff] (!%p1092_p5)  ;;  %v667_v12 = vld [vmem:[%s2150_s13 + $0x70] sm:$0xff] (!%p1092_p5) }
  0xf8   : > { %1240 = vmatprep.subr.bf16.mxu0 (!%p1092_p5), %v1239_v15  ;;  %1281 = vmatprep.subr.bf16.mxu1 (!%p1092_p5), %v1239_v15  ;;  %v660_v15 = vld [vmem:[%s2150_s13 + $0x38] sm:$0xff] (!%p1092_p5) }
 0x1c1   : > { %v1217_v21 = vpop.f32.mrb[0].mxu0  ;;  %v1225_v22 = vpop.f32.mrb[0].mxu1 }
 0x1c2   : > { %v619_v25 = vadd.f32 %v1217_v21, %v378_v17  ;;  %v627_v26 = vadd.f32 %v1225_v22, %v386_v18  ;;  %v554_v27 = vpop.f32.mrb[1].mxu0  ;;  %v586_v28 = vpop.f32.mrb[1].mxu1  ;;  %v690_v17 = vld [vmem:[#allocation9 + $0x28] sm:$0xff] (!%p1092_p5)  ;;  %v707_v18 = vld [vmem:[#allocation9 + $0xb0] sm:$0xff] (!%p1092_p5) }
 0x1c3   : > { %v617_v31 = vadd.f32 %v554_v27, %v376_v19  ;;  %v625_v32 = vadd.f32 %v586_v28, %v384_v20  ;;  %v1218_v33 = vpop.f32.mrb[2].mxu0  ;;  %v1226_v34 = vpop.f32.mrb[2].mxu1  ;;  %v708_v19 = vld [vmem:[#allocation9 + $0xb8] sm:$0xff] (!%p1092_p5)  ;;  %v1241_v20 = vpack.c.bf16 (!%p1092_p5), %v690_v17, %v689_v16  ;;  %v691_v22 = vld [vmem:[#allocation9 + $0x30] sm:$0xff] (!%p1092_p5) }
 0x1c4   : > { %635 = vst [vmem:[#allocation2 + $0x10] sm:$0xff] %v619_v25  ;;  %643 = vst [vmem:[#allocation2 + $0x50] sm:$0xff] %v627_v26  ;;  %v620_v35 = vadd.f32 %v1218_v33, %v379_v23  ;;  %v628_v36 = vadd.f32 %v1226_v34, %v387_v24  ;;  %v557_v37 = vpop.f32.mrb[3].mxu0  ;;  %v589_v38 = vpop.f32.mrb[3].mxu1  ;;  %v1243_v21 = vpack.c.bf16 (!%p1092_p5), %v708_v19, %v707_v18  ;;  %v692_v23 = vld [vmem:[#allocation9 + $0x38] sm:$0xff] (!%p1092_p5)  ;;  %v709_v24 = vld [vmem:[#allocation9 + $0xc0] sm:$0xff] (!%p1092_p5) }
 0x1c5   : > { %633 = vst [vmem:[#allocation2] sm:$0xff] %v617_v31  ;;  %641 = vst [vmem:[#allocation2 + $0x40] sm:$0xff] %v625_v32  ;;  %v618_v39 = vadd.f32 %v557_v37, %v377_v29  ;;  %v626_v40 = vadd.f32 %v589_v38, %v385_v30  ;;  %v710_v25 = vld [vmem:[#allocation9 + $0xc8] sm:$0xff] (!%p1092_p5)  ;;  %1242 = vmatpush3.bf16.msra.mxu0 (!%p1092_p5), %v1241_v20  ;;  %1289 = vmatpush3.bf16.msra.mxu1 (!%p1092_p5), %v1241_v20  ;;  %v693_v30 = vld [vmem:[#allocation9 + $0x40] sm:$0xff] (!%p1092_p5) }
 0x1c6   : > { %636 = vst [vmem:[#allocation2 + $0x18] sm:$0xff] %v620_v35  ;;  %644 = vst [vmem:[#allocation2 + $0x58] sm:$0xff] %v628_v36  ;;  %v1245_v28 = vpack.c.bf16 (!%p1092_p5), %v692_v23, %v691_v22  ;;  %1244 = vmatprep.subr.bf16.mxu0 (!%p1092_p5), %v1243_v21  ;;  %1282 = vmatprep.subr.bf16.mxu1 (!%p1092_p5), %v1243_v21  ;;  %v1247_v29 = vpack.c.bf16 (!%p1092_p5), %v710_v25, %v709_v24  ;;  %v694_v31 = vld [vmem:[#allocation9 + $0x48] sm:$0xff] (!%p1092_p5)  ;;  %v711_v32 = vld [vmem:[#allocation9 + $0xd0] sm:$0xff] (!%p1092_p5) }
 0x1c7   : > { %634 = vst [vmem:[#allocation2 + $0x8] sm:$0xff] %v618_v39  ;;  %642 = vst [vmem:[#allocation2 + $0x48] sm:$0xff] %v626_v40  ;;  %v712_v33 = vld [vmem:[#allocation9 + $0xd8] sm:$0xff] (!%p1092_p5)  ;;  %v1249_v34 = vpack.c.bf16 (!%p1092_p5), %v694_v31, %v693_v30  ;;  %v695_v36 = vld [vmem:[#allocation9 + $0x50] sm:$0xff] (!%p1092_p5) }
 0x1c8   : > { %v1251_v35 = vpack.c.bf16 (!%p1092_p5), %v712_v33, %v711_v32  ;;  %v696_v37 = vld [vmem:[#allocation9 + $0x58] sm:$0xff] (!%p1092_p5)  ;;  %v713_v38 = vld [vmem:[#allocation9 + $0xe0] sm:$0xff] (!%p1092_p5)  ;;  %v714_v39 = vld [vmem:[#allocation9 + $0xe8] sm:$0xff] (!%p1092_p5) }
 0x1c9   : > { %v1221_v45 = vpop.f32.mrb[4].mxu0  ;;  %v1229_v46 = vpop.f32.mrb[4].mxu1  ;;  %652 = sbr.rel (%p1092_p5) target bundleno = 725 (0x2d5), region = 64  ;;  %1246 = vmatpush3.bf16.msra.mxu0 (!%p1092_p5), %v1245_v28  ;;  %1290 = vmatpush3.bf16.msra.mxu1 (!%p1092_p5), %v1245_v28  ;;  %v1253_v40 = vpack.c.bf16 (!%p1092_p5), %v696_v37, %v695_v36  ;;  %v668_v16 = vld [vmem:[%s2150_s13 + $0x78] sm:$0xff] (!%p1092_p5)  ;;  %v2199_v19 = vld [vmem:[%s2387_s27] ss:$0 sm:$0xff] (!%p1092_p5) }
 0x1ca   : > { %v623_v49 = vadd.f32 %v1221_v45, %v382_v41  ;;  %v631_v50 = vadd.f32 %v1229_v46, %v390_v42  ;;  %v570_v51 = vpop.f32.mrb[5].mxu0  ;;  %v602_v52 = vpop.f32.mrb[5].mxu1  ;;  %1248 = vmatprep.subr.bf16.mxu0 (!%p1092_p5), %v1247_v29  ;;  %1283 = vmatprep.subr.bf16.mxu1 (!%p1092_p5), %v1247_v29  ;;  %v1255_v41 = vpack.c.bf16 (!%p1092_p5), %v714_v39, %v713_v38  ;;  %v697_v42 = vld [vmem:[#allocation9 + $0x60] sm:$0xff] (!%p1092_p5)  ;;  %v716_v45 = vld [vmem:[#allocation9 + $0xf8] sm:$0xff] (!%p1092_p5) }
 0x1cb   : > { %v621_v55 = vadd.f32 %v570_v51, %v380_v43  ;;  %v629_v56 = vadd.f32 %v602_v52, %v388_v44  ;;  %v1222_v57 = vpop.f32.mrb[6].mxu0  ;;  %v1230_v58 = vpop.f32.mrb[6].mxu1  ;;  %v698_v43 = vld [vmem:[#allocation9 + $0x68] sm:$0xff] (!%p1092_p5)  ;;  %v715_v44 = vld [vmem:[#allocation9 + $0xf0] sm:$0xff] (!%p1092_p5)  ;;  %v653_v51 = vld [vmem:[%s2150_s13] sm:$0xff] (!%p1092_p5) }
 0x1cc   : > { %639 = vst [vmem:[#allocation2 + $0x30] sm:$0xff] %v623_v49  ;;  %647 = vst [vmem:[#allocation2 + $0x70] sm:$0xff] %v631_v50  ;;  %v624_v59 = vadd.f32 %v1222_v57, %v383_v47  ;;  %v632_v60 = vadd.f32 %v1230_v58, %v391_v48  ;;  %v573_v61 = vpop.f32.mrb[7].mxu0  ;;  %v605_v62 = vpop.f32.mrb[7].mxu1  ;;  %v669_v26 = vld [vmem:[#allocation2] sm:$0xff] (!%p1092_p5)  ;;  %v1257_v46 = vpack.c.bf16 (!%p1092_p5), %v698_v43, %v697_v42  ;;  %v699_v48 = vld [vmem:[#allocation9 + $0x70] sm:$0xff] (!%p1092_p5) }
 0x1cd   : > { %637 = vst [vmem:[#allocation2 + $0x20] sm:$0xff] %v621_v55  ;;  %645 = vst [vmem:[#allocation2 + $0x60] sm:$0xff] %v629_v56  ;;  %v622_v63 = vadd.f32 %v573_v61, %v381_v53  ;;  %v630_v0 = vadd.f32 %v605_v62, %v389_v54  ;;  %788 = vmatprep.mubr.f32.mxu0 (!%p1092_p5), %v669_v26  ;;  %v677_v27 = vld [vmem:[#allocation2 + $0x40] sm:$0xff] (!%p1092_p5)  ;;  %1250 = vmatpush3.bf16.msra.mxu0 (!%p1092_p5), %v1249_v34  ;;  %v700_v49 = vld [vmem:[#allocation9 + $0x78] sm:$0xff] (!%p1092_p5) }
 0x1ce   : > { %640 = vst [vmem:[#allocation2 + $0x38] sm:$0xff] %v624_v59  ;;  %648 = vst [vmem:[#allocation2 + $0x78] sm:$0xff] %v632_v60  ;;  %828 = vmatprep.mubr.f32.mxu1 (!%p1092_p5), %v677_v27  ;;  %1291 = vmatpush3.bf16.msra.mxu1 (!%p1092_p5), %v1249_v34  ;;  %v1259_v47 = vpack.c.bf16 (!%p1092_p5), %v716_v45, %v715_v44  ;;  %v1261_v50 = vpack.c.bf16 (!%p1092_p5), %v700_v49, %v699_v48  ;;  %v661_v52 = vld [vmem:[%s2150_s13 + $0x40] sm:$0xff] (!%p1092_p5)  ;;  %v670_v53 = vld [vmem:[#allocation2 + $0x8] sm:$0xff] (!%p1092_p5) }
 0x1cf   : > { %638 = vst [vmem:[#allocation2 + $0x28] sm:$0xff] %v622_v63  ;;  %646 = vst [vmem:[#allocation2 + $0x68] sm:$0xff] %v630_v0  ;;  %1252 = vmatprep.subr.bf16.mxu0 (!%p1092_p5), %v1251_v35  ;;  %1284 = vmatprep.subr.bf16.mxu1 (!%p1092_p5), %v1251_v35  ;;  %v678_v54 = vld [vmem:[#allocation2 + $0x48] sm:$0xff] (!%p1092_p5)  ;;  %v671_v57 = vld [vmem:[#allocation2 + $0x10] sm:$0xff] (!%p1092_p5) }
 0x1d0   : > { %v654_v55 = vld [vmem:[%s2150_s13 + $0x8] sm:$0xff]  ;;  %v679_v58 = vld [vmem:[#allocation2 + $0x50] sm:$0xff]  ;;  %v672_v61 = vld [vmem:[#allocation2 + $0x18] sm:$0xff] }
 0x1d1   : > { %1254 = vmatpush3.bf16.msra.mxu0 %v1253_v40  ;;  %v662_v56 = vld [vmem:[%s2150_s13 + $0x48] sm:$0xff]  ;;  %v655_v59 = vld [vmem:[%s2150_s13 + $0x10] sm:$0xff]  ;;  %v680_v62 = vld [vmem:[#allocation2 + $0x58] sm:$0xff] }
 0x1d2   : > { %1292 = vmatpush3.bf16.msra.mxu1 %v1253_v40  ;;  %1256 = vmatprep.subr.bf16.mxu0 %v1255_v41  ;;  %v663_v60 = vld [vmem:[%s2150_s13 + $0x50] sm:$0xff]  ;;  %v656_v63 = vld [vmem:[%s2150_s13 + $0x18] sm:$0xff] }
 0x1d3   : > { %1285 = vmatprep.subr.bf16.mxu1 %v1255_v41  ;;  %v664_v0 = vld [vmem:[%s2150_s13 + $0x58] sm:$0xff]  ;;  %v675_v9 = vld [vmem:[#allocation2 + $0x30] sm:$0xff] }
 0x1d4   : > { %v673_v1 = vld [vmem:[#allocation2 + $0x20] sm:$0xff]  ;;  %v683_v10 = vld [vmem:[#allocation2 + $0x70] sm:$0xff] }
 0x1d5   : > { %1258 = vmatpush3.bf16.msra.mxu0 %v1257_v46  ;;  %v681_v2 = vld [vmem:[#allocation2 + $0x60] sm:$0xff]  ;;  %v676_v13 = vld [vmem:[#allocation2 + $0x38] sm:$0xff] }
 0x1d6   : > { %1293 = vmatpush3.bf16.msra.mxu1 %v1257_v46  ;;  %1260 = vmatprep.subr.bf16.mxu0 %v1259_v47  ;;  %v674_v5 = vld [vmem:[#allocation2 + $0x28] sm:$0xff]  ;;  %v684_v14 = vld [vmem:[#allocation2 + $0x78] sm:$0xff] }
 0x1d7   : > { %1286 = vmatprep.subr.bf16.mxu1 %v1259_v47  ;;  %v682_v6 = vld [vmem:[#allocation2 + $0x68] sm:$0xff] }
 0x1d9   : > { %1262 = vmatpush3.bf16.msra.mxu0 %v1261_v50 }
 0x1da   : > { %1294 = vmatpush3.bf16.msra.mxu1 %v1261_v50 }
 0x1dc   : > { %789 = vmatmul.mubr.f32.vlgmr.msra.gmra.mrb[0].mxu0 %v653_v51 }
 0x1dd   : > { %829 = vmatmul.mubr.f32.vlgmr.msra.gmra.mrb[0].mxu1 %v661_v52  ;;  %793 = vmatprep.mubr.f32.mxu0 %v670_v53 }
 0x1de   : > { %833 = vmatprep.mubr.f32.mxu1 %v678_v54 }
 0x1e0   : > { %794 = vmatmul.mubr.f32.gmra.mrb[2].mxu0 %v654_v55 }
 0x1e1   : > { %834 = vmatmul.mubr.f32.gmra.mrb[2].mxu1 %v662_v56  ;;  %798 = vmatprep.mubr.f32.mxu0 %v671_v57 }
 0x1e2   : > { %838 = vmatprep.mubr.f32.mxu1 %v679_v58 }
 0x1e4   : > { %799 = vmatmul.mubr.f32.gmra.mrb[4].mxu0 %v655_v59 }
 0x1e5   : > { %839 = vmatmul.mubr.f32.gmra.mrb[4].mxu1 %v663_v60  ;;  %803 = vmatprep.mubr.f32.mxu0 %v672_v61 }
 0x1e6   : > { %843 = vmatprep.mubr.f32.mxu1 %v680_v62 }
 0x1e8   : > { %804 = vmatmul.mubr.f32.gmra.mrb[6].mxu0 %v656_v63 }
 0x1e9   : > { %844 = vmatmul.mubr.f32.gmra.mrb[6].mxu1 %v664_v0  ;;  %808 = vmatprep.mubr.f32.mxu0 %v673_v1 }
 0x1ea   : > { %848 = vmatprep.mubr.f32.mxu1 %v681_v2 }
 0x1ec   : > { %809 = vmatmul.mubr.f32.gmra.mrb[8].mxu0 %v657_v3 }
 0x1ed   : > { %849 = vmatmul.mubr.f32.gmra.mrb[8].mxu1 %v665_v4  ;;  %813 = vmatprep.mubr.f32.mxu0 %v674_v5 }
 0x1ee   : > { %853 = vmatprep.mubr.f32.mxu1 %v682_v6 }
 0x1f0   : > { %814 = vmatmul.mubr.f32.gmra.mrb[10].mxu0 %v658_v7 }
 0x1f1   : > { %854 = vmatmul.mubr.f32.gmra.mrb[10].mxu1 %v666_v8  ;;  %818 = vmatprep.mubr.f32.mxu0 %v675_v9 }
 0x1f2   : > { %858 = vmatprep.mubr.f32.mxu1 %v683_v10 }
 0x1f4   : > { %819 = vmatmul.mubr.f32.gmra.mrb[12].mxu0 %v659_v11 }
 0x1f5   : > { %859 = vmatmul.mubr.f32.gmra.mrb[12].mxu1 %v667_v12  ;;  %823 = vmatprep.mubr.f32.mxu0 %v676_v13 }
 0x1f6   : > { %863 = vmatprep.mubr.f32.mxu1 %v684_v14 }
 0x1f8   : > { %824 = vmatmul.mubr.f32.gmra.mrb[14].mxu0 %v660_v15 }
 0x1f9   : > { %864 = vmatmul.mubr.f32.gmra.mrb[14].mxu1 %v668_v16 }
 0x2af   : > { %v1151_v17 = vpop.f32.mrb[0].mxu0 }
 0x2b0   : > { %v1175_v18 = vpop.f32.mrb[0].mxu1  ;;  %v1152_v20 = vpop.f32.mrb[1].mxu0 }
 0x2b1   : > { %v1176_v21 = vpop.f32.mrb[1].mxu1  ;;  %v1153_v22 = vadd.f32 %v1152_v20, %v1151_v17 }
 0x2b2   : > { %v1177_v23 = vadd.f32 %v1176_v21, %v1175_v18 }
 0x2b3   : > { %v791_v24 = vadd.f32 %v1153_v22, %v2199_v19  ;;  %v1154_v26 = vpop.f32.mrb[2].mxu0 }
 0x2b4   : > { %v831_v25 = vadd.f32 %v1177_v23, %v2199_v19  ;;  %v1178_v27 = vpop.f32.mrb[2].mxu1  ;;  %v1155_v28 = vpop.f32.mrb[3].mxu0 }
 0x2b5   : > { %v1179_v29 = vpop.f32.mrb[3].mxu1  ;;  %v869_v30 = vmax.f32 %v791_v24, 0.0  ;;  %v1156_v32 = vadd.f32 %v1155_v28, %v1154_v26 }
 0x2b6   : > { %v877_v31 = vmax.f32 %v831_v25, 0.0  ;;  %v1180_v33 = vadd.f32 %v1179_v29, %v1178_v27 }
 0x2b7   : > { %885 = vst [vmem:[%s2160_s16] sm:$0xff] %v869_v30  ;;  %v796_v34 = vadd.f32 %v1156_v32, %v2199_v19  ;;  %v1157_v36 = vpop.f32.mrb[4].mxu0 }
 0x2b8   : > { %893 = vst [vmem:[%s2160_s16 + $0x40] sm:$0xff] %v877_v31  ;;  %v836_v35 = vadd.f32 %v1180_v33, %v2199_v19  ;;  %v1181_v37 = vpop.f32.mrb[4].mxu1  ;;  %v1158_v38 = vpop.f32.mrb[5].mxu0 }
 0x2b9   : > { %v1182_v39 = vpop.f32.mrb[5].mxu1  ;;  %v870_v40 = vmax.f32 %v796_v34, 0.0  ;;  %v1159_v42 = vadd.f32 %v1158_v38, %v1157_v36 }
 0x2ba   : > { %v878_v41 = vmax.f32 %v836_v35, 0.0  ;;  %v1183_v43 = vadd.f32 %v1182_v39, %v1181_v37 }
 0x2bb   : > { %886 = vst [vmem:[%s2160_s16 + $0x8] sm:$0xff] %v870_v40  ;;  %v801_v44 = vadd.f32 %v1159_v42, %v2199_v19  ;;  %v1160_v46 = vpop.f32.mrb[6].mxu0 }
 0x2bc   : > { %894 = vst [vmem:[%s2160_s16 + $0x48] sm:$0xff] %v878_v41  ;;  %v841_v45 = vadd.f32 %v1183_v43, %v2199_v19  ;;  %v1184_v47 = vpop.f32.mrb[6].mxu1  ;;  %v1161_v48 = vpop.f32.mrb[7].mxu0 }
 0x2bd   : > { %v1185_v49 = vpop.f32.mrb[7].mxu1  ;;  %v871_v50 = vmax.f32 %v801_v44, 0.0  ;;  %v1162_v52 = vadd.f32 %v1161_v48, %v1160_v46 }
 0x2be   : > { %v879_v51 = vmax.f32 %v841_v45, 0.0  ;;  %v1186_v53 = vadd.f32 %v1185_v49, %v1184_v47 }
 0x2bf   : > { %887 = vst [vmem:[%s2160_s16 + $0x10] sm:$0xff] %v871_v50  ;;  %v806_v54 = vadd.f32 %v1162_v52, %v2199_v19  ;;  %v1163_v56 = vpop.f32.mrb[8].mxu0 }
 0x2c0   : > { %895 = vst [vmem:[%s2160_s16 + $0x50] sm:$0xff] %v879_v51  ;;  %v846_v55 = vadd.f32 %v1186_v53, %v2199_v19  ;;  %v1187_v57 = vpop.f32.mrb[8].mxu1  ;;  %v1164_v58 = vpop.f32.mrb[9].mxu0 }
 0x2c1   : > { %v1188_v59 = vpop.f32.mrb[9].mxu1  ;;  %v872_v60 = vmax.f32 %v806_v54, 0.0  ;;  %v1165_v62 = vadd.f32 %v1164_v58, %v1163_v56 }
 0x2c2   : > { %v880_v61 = vmax.f32 %v846_v55, 0.0  ;;  %v1189_v63 = vadd.f32 %v1188_v59, %v1187_v57 }
 0x2c3   : > { %888 = vst [vmem:[%s2160_s16 + $0x18] sm:$0xff] %v872_v60  ;;  %v811_v0 = vadd.f32 %v1165_v62, %v2199_v19  ;;  %v1166_v2 = vpop.f32.mrb[10].mxu0 }
 0x2c4   : > { %896 = vst [vmem:[%s2160_s16 + $0x58] sm:$0xff] %v880_v61  ;;  %v851_v1 = vadd.f32 %v1189_v63, %v2199_v19  ;;  %v1190_v3 = vpop.f32.mrb[10].mxu1  ;;  %v1167_v4 = vpop.f32.mrb[11].mxu0 }
 0x2c5   : > { %v1191_v5 = vpop.f32.mrb[11].mxu1  ;;  %v873_v6 = vmax.f32 %v811_v0, 0.0  ;;  %v1168_v8 = vadd.f32 %v1167_v4, %v1166_v2 }
 0x2c6   : > { %v881_v7 = vmax.f32 %v851_v1, 0.0  ;;  %v1192_v9 = vadd.f32 %v1191_v5, %v1190_v3 }
 0x2c7   : > { %889 = vst [vmem:[%s2160_s16 + $0x20] sm:$0xff] %v873_v6  ;;  %v816_v10 = vadd.f32 %v1168_v8, %v2199_v19  ;;  %v1169_v12 = vpop.f32.mrb[12].mxu0 }
 0x2c8   : > { %897 = vst [vmem:[%s2160_s16 + $0x60] sm:$0xff] %v881_v7  ;;  %v856_v11 = vadd.f32 %v1192_v9, %v2199_v19  ;;  %v1193_v13 = vpop.f32.mrb[12].mxu1  ;;  %v1170_v14 = vpop.f32.mrb[13].mxu0 }
 0x2c9   : > { %v1194_v15 = vpop.f32.mrb[13].mxu1  ;;  %v874_v16 = vmax.f32 %v816_v10, 0.0  ;;  %v1171_v18 = vadd.f32 %v1170_v14, %v1169_v12 }
 0x2ca   : > { %v882_v17 = vmax.f32 %v856_v11, 0.0  ;;  %v1195_v20 = vadd.f32 %v1194_v15, %v1193_v13 }
 0x2cb   : > { %890 = vst [vmem:[%s2160_s16 + $0x28] sm:$0xff] %v874_v16  ;;  %v821_v21 = vadd.f32 %v1171_v18, %v2199_v19  ;;  %v1172_v23 = vpop.f32.mrb[14].mxu0 }
 0x2cc   : > { %898 = vst [vmem:[%s2160_s16 + $0x68] sm:$0xff] %v882_v17  ;;  %v861_v22 = vadd.f32 %v1195_v20, %v2199_v19  ;;  %v1196_v24 = vpop.f32.mrb[14].mxu1  ;;  %v1173_v25 = vpop.f32.mrb[15].mxu0 }
 0x2cd   : > { %v1197_v26 = vpop.f32.mrb[15].mxu1  ;;  %v875_v27 = vmax.f32 %v821_v21, 0.0  ;;  %v1174_v29 = vadd.f32 %v1173_v25, %v1172_v23 }
 0x2ce   : > { %v883_v28 = vmax.f32 %v861_v22, 0.0  ;;  %v1198_v30 = vadd.f32 %v1197_v26, %v1196_v24 }
 0x2cf   : > { %891 = vst [vmem:[%s2160_s16 + $0x30] sm:$0xff] %v875_v27  ;;  %v826_v31 = vadd.f32 %v1174_v29, %v2199_v19 }
 0x2d0   : > { %899 = vst [vmem:[%s2160_s16 + $0x70] sm:$0xff] %v883_v28  ;;  %v866_v32 = vadd.f32 %v1198_v30, %v2199_v19 }
 0x2d1   : > { %v876_v33 = vmax.f32 %v826_v31, 0.0 }
 0x2d2   : > { %v884_v34 = vmax.f32 %v866_v32, 0.0 }
 0x2d3   : > { %892 = vst [vmem:[%s2160_s16 + $0x38] sm:$0xff] %v876_v33 }
 0x2d4   : > { %900 = vst [vmem:[%s2160_s16 + $0x78] sm:$0xff] %v884_v34 }
 0x2d5 PF: > { %s2388_s21 = sld [smem:[#allocation19_spill]]  ;;  %s2389_s4 = sld [smem:[#allocation26_spill]] }
 0x2d6   : > { %s915_s24 = sshll.u32 %s2160_s16, 4  ;;  %s2244_s5 = scalar_lea.sflag [#allocation5], %s308_s23  ;;  %s2240_s24 = int_to_ptr.vmem [resolvable:$true] %s915_s24 }
 0x2d7   : > { %s1583_s13 = scalar_lea.vmem %s2240_s24, 2048  ;;  %p2390_p9 = scmp.ne.s32.totalorder %s2372_s12, 0 }
 0x2d8   : > { %p1584_p4 = scmp.ne.s32.totalorder %s2240_s24, %s1583_s13  ;;  %s1752_s9 = smov [#allocation11]  }
 0x2d9   : > { %s1587_s11 = sshll.u32 %s1752_s9, 4  ;;  %s1588_s11 = int_to_ptr.vmem [resolvable:$false] %s1587_s11 }
 0x2da   : > { %p1585_p1 = pnand %p1584_p4, %p2390_p9  ;;  %s1589_s1 = scalar_lea.vmem %s1588_s11, 4096 }
 0x2db   : > { %s1102_s7 = sshll.u32 %s2388_s21, 11  ;;  %p1590_p0 = scmp.lt.s32.totalorder %s2240_s24, %s1588_s11 }
 0x2dc   : > { %s2237_s14 = scalar_lea.hbm %s2389_s4, %s1102_s7  ;;  %p1586_p7 = pneg %p1585_p1 }
 0x2dd   : > { %p1591_p13 = scmp.lt.s32.totalorder %s1589_s1, %s1583_s13 }
 0x2df   : > { %p1592_p3 = por %p1591_p13, %p1590_p0 }
 0x2e1   : > { %p1593_p10 = pnand %p1592_p3, %p1586_p7 }
 0x2e3   : > { %1596 = shalt.err (!%p1593_p10)
}
 0x2e4   : > { %s1597_s23 = scalar_lea.hbm %s2237_s14, 2048  ;;  %s1601_s27 = scalar_lea.hbm %s2389_s4, 4096 }
 0x2e5   : > { %p1598_p11 = scmp.ne.s32.totalorder %s2237_s14, %s1597_s23  ;;  %p1602_p6 = scmp.lt.u32.totalorder %s2237_s14, %s2389_s4 }
 0x2e6   : > { %p1603_p12 = scmp.lt.u32.totalorder %s1601_s27, %s1597_s23  ;;  %p1605_p4 = scmp.lt.u32.totalorder %s1597_s23, %s2237_s14 }
 0x2e7   : > { %p1599_p2 = pnand %p1598_p11, %p2390_p9 }
 0x2e8   : > { %p1604_p5 = por %p1603_p12, %p1602_p6 }
 0x2e9   : > { %p1600_p8 = pneg %p1599_p2 }
 0x2ea   : > { %p1606_p1 = por %p1605_p4, %p1604_p5 }
 0x2ec   : > { %p1607_p7 = pnand %p1606_p1, %p1600_p8 }
 0x2ee   : > { %1610 = shalt.err (!%p1607_p7)
}
 0x2ef   : > { %s1753_s0 = smov 128   ;;  %s1754_s17 = smov 8  }
 0x2f0   : > { %1305 = dma.vmem_to_hbm [thread:$0]  (%p2390_p9), %s2240_s24, 2048, %s2237_s14, %s2244_s5, %s1753_s0, %s1753_s0, %s1754_s17  }
 0x2f1 PF: > { %p1328_p0 = scmp.ge.s32.totalorder %s1741_s6, 2  ;;  %s930_s13 = sand.u32 1, %s1689_s18  }
 0x2f2   : > { %p2391_p13 = scmp.ne.s32.totalorder %s2375_s15, 0  ;;  %s931_s9 = scalar_lea.sflag [#allocation5], %s930_s13 }
 0x2f4   : > { %p1322_p3 = pnand %p1328_p0, %p2391_p13 }
 0x2f6   : > { %1684 = dma.done.wait (!%p1322_p3), %s931_s9, 2048  }
 0x2f7   : > { %1686 = vsyncadd (!%p1322_p3), %s931_s9, 4294965248  ;;  %s25_s6 = sadd.s32 1, %s1741_s6   ;;  %s2393_s12 = sld [smem:[#allocation17_spill]] }
 0x2f8   : > { %p2273_p10 = scmp.ge.s32.totalorder %s25_s6, 6   ;;  %s2394_s23 = sld [smem:[#allocation22_spill]] }
 0x2f9   : > { %s2395_s15 = sld [smem:[#allocation20_spill]]  ;;  %s2396_s14 = sld [smem:[#allocation21_spill]] }
 0x2fa   : > { %s2397_s18 = smov %s1693_s19  ;;  %s2398_s19 = smov %s1697_s20 }
 0x2fb   : > { %s2399_s20 = smov %s2058_s8  ;;  %s2400_s21 = smov %s1705_s22 }
 0x2fc   : > { %s2402_s24 = smov %s1717_s25  ;;  %s2403_s25 = smov %s1721_s26 }
 0x2fd   : > { %s2401_s22 = smov %s2393_s12  ;;  %s2404_s26 = smov %s1992_s28 }
 0x2fe   : > { %s2405_s27 = smov %s1733_s29  ;;  %s2406_s28 = smov %s1737_s30 }
 0x2ff   : > { %s2407_s29 = smov %s2395_s15  ;;  %s2408_s30 = smov %s2396_s14 }
 0x300   :  { %24 = sbr.rel (!%p2273_p10) target bundleno = 18 (0x12), region = 121 }
 0x307   :  { %936 = vsyncpa [#allocation4], 1 }
 0x308   :  { %938 = vsyncpa [#allocation4 + $0x1], 1 }
 0x309   :  { %939 = vsyncpa [#allocation7], 1 }
 0x30a   :  { %941 = vsyncpa [#allocation7 + $0x1], 1 }
 0x30b   :  { %942 = vsyncpa [#allocation10], 1 }
 0x30c   :  { %943 = vsyncpa [#allocation5], 1 }
 0x30d   :  { %945 = vsyncpa [#allocation5 + $0x1], 1 }

</bundles_post_ra>
